<compile_context>
chip_gen: v7x
topology: tpu7x:2x2x1
jax: 0.10.0
libtpu: 0.0.40
codegen_flags: <defaults>
</compile_context>

<pallas_src>
import functools

import jax
import jax.numpy as jnp
from jax.experimental import pallas as pl
from jax.experimental.pallas import tpu as pltpu


def _round_up(x, m):
    return (x + m - 1) // m * m


@functools.lru_cache(maxsize=None)
def _vmem_budget_bytes():
    """~75% of physical VMEM: 48 MiB on v7x, 96 MiB on v5e/v6e."""
    cap = 64 * 1024 * 1024          # conservative fallback (v7x-sized)
    try:
        cap = int(getattr(pltpu.get_tpu_info(), "vmem_capacity_bytes", cap))
    except Exception:
        pass
    return (3 * cap) // 4


def _pick_tile_rows(B, latent_dim, h1, h2, out_pad, budget, max_rows=1024):
    """Largest sublane-aligned batch tile that fits the VMEM budget."""
    # Resident (double-buffered) bf16 weights + f32 biases.
    fixed = 2 * (2 * (latent_dim * h1 + h1 * h2 + h2 * out_pad)
                 + 4 * (h1 + h2 + out_pad))
    # Per batch-row bytes: double-buffered f32 z/out tiles + f32 h1/h2/h3
    # temporaries + bf16 casts of the three matmul LHS operands.
    per_row = (2 * 4 * latent_dim + 2 * 4 * out_pad
               + 4 * (h1 + h2 + out_pad)
               + 2 * (latent_dim + h1 + h2))
    tm = max(8, min(max_rows, (budget - fixed) // per_row))
    tm = (tm // 8) * 8
    tm = min(tm, _round_up(B, 8))          # never bigger than the batch
    if B > 8:                              # keep grid >= 2 so both v7x TCs run
        tm = min(tm, _round_up(pl.cdiv(B, 2), 8))
    return max(8, tm)


def _generator_kernel(z_ref, w1_ref, b1_ref, w2_ref, b2_ref, w3_ref, b3_ref,
                      out_ref):
    # fc1 + relu  (bf16 MXU inputs, f32 accumulation, f32 elementwise)
    z = z_ref[...].astype(jnp.bfloat16)
    h1 = jnp.dot(z, w1_ref[...], preferred_element_type=jnp.float32)
    h1 = jnp.maximum(h1 + b1_ref[...], 0.0)
    # fc2 + relu
    h2 = jnp.dot(h1.astype(jnp.bfloat16), w2_ref[...],
                 preferred_element_type=jnp.float32)
    h2 = jnp.maximum(h2 + b2_ref[...], 0.0)
    # fc3 (no activation), lane-dense padded output
    h3 = jnp.dot(h2.astype(jnp.bfloat16), w3_ref[...],
                 preferred_element_type=jnp.float32)
    out_ref[...] = (h3 + b3_ref[...]).astype(out_ref.dtype)


def prepare_params(params, n_channels, ts_length):
    """One-time device-side weight prep (hoisted out of the per-call forward):
    bf16 weight casts + lane-padding of fc3 weight/bias to a multiple of 128."""
    w1, b1, w2, b2, w3, b3 = params
    out_dim = n_channels * ts_length
    out_pad = _round_up(out_dim, 128)
    w3p = jnp.pad(w3, ((0, 0), (0, out_pad - out_dim)))
    b3p = jnp.pad(b3, ((0, 0), (0, out_pad - out_dim)))
    # TODO(synk): optional v7x-only fp8 (e4m3) storage of w2/w3 with per-tensor
    # scales (gated on an accuracy check) would further halve weight DMA/VMEM.
    return (w1.astype(jnp.bfloat16), b1.astype(jnp.float32),
            w2.astype(jnp.bfloat16), b2.astype(jnp.float32),
            w3p.astype(jnp.bfloat16), b3p.astype(jnp.float32))


@functools.partial(jax.jit, static_argnums=(2, 3))
def generator_forward(z, prepared_params, n_channels, ts_length):
    """z: (B, latent_dim) f32 -> (B, n_channels, ts_length) f32."""
    w1, b1, w2, b2, w3, b3 = prepared_params
    B, latent_dim = z.shape
    h1_dim = w1.shape[1]
    h2_dim = w2.shape[1]
    out_dim = n_channels * ts_length
    out_pad = w3.shape[1]                      # already lane-padded in prepare_params
    assert out_pad == _round_up(out_dim, 128)

    budget = _vmem_budget_bytes()
    TM = _pick_tile_rows(B, latent_dim, h1_dim, h2_dim, out_pad, budget)
    grid = (pl.cdiv(B, TM),)                   # ragged last block handled by Pallas

    const = lambda i: (0, 0)                   # weights stay VMEM-resident across grid
    # NOTE: the constant-index weight specs remain default double-buffered;
    # that (~0.8 MiB here) is accounted for in the VMEM budget above.
    in_specs = [
        pl.BlockSpec((TM, latent_dim), lambda i: (i, 0)),   # z tile
        pl.BlockSpec((latent_dim, h1_dim), const),          # w1
        pl.BlockSpec((1, h1_dim), const),                   # b1
        pl.BlockSpec((h1_dim, h2_dim), const),              # w2
        pl.BlockSpec((1, h2_dim), const),                   # b2
        pl.BlockSpec((h2_dim, out_pad), const),             # w3 (lane-padded)
        pl.BlockSpec((1, out_pad), const),                  # b3 (lane-padded)
    ]
    out_spec = pl.BlockSpec((TM, out_pad), lambda i: (i, 0))

    flops = 2 * B * (latent_dim * h1_dim + h1_dim * h2_dim + h2_dim * out_pad)
    bytes_accessed = (z.size * 4 + B * out_pad * 4
                      + (w1.size + w2.size + w3.size) * 2
                      + (b1.size + b2.size + b3.size) * 4)

    out_flat = pl.pallas_call(
        _generator_kernel,
        out_shape=jax.ShapeDtypeStruct((B, out_pad), jnp.float32),
        grid_spec=pltpu.PrefetchScalarGridSpec(
            num_scalar_prefetch=0,
            grid=grid,
            in_specs=in_specs,
            out_specs=out_spec,
        ),
        compiler_params=pltpu.CompilerParams(
            dimension_semantics=("parallel",),      # megacore / v7x dual-TC sharding
            vmem_limit_bytes=budget,
        ),
        cost_estimate=pl.CostEstimate(
            flops=flops, transcendentals=0, bytes_accessed=bytes_accessed),
    )(z, w1, b1, w2, b2, w3, b3)

    if out_pad == out_dim:                       # already lane-dense: free reshape
        return out_flat.reshape(B, n_channels, ts_length)
    return out_flat[:, :out_dim].reshape(B, n_channels, ts_length)


def init_params(key, latent_dim, n_channels, ts_length):
    """Deterministic init mimicking nn.Linear default (uniform +- 1/sqrt(fan_in))."""
    dims = [(latent_dim, 256), (256, 512), (512, n_channels * ts_length)]
    params = []
    for fan_in, fan_out in dims:
        key, kw, kb = jax.random.split(key, 3)
        bound = 1.0 / float(fan_in) ** 0.5
        w = jax.random.uniform(kw, (fan_in, fan_out), jnp.float32, -bound, bound)
        b = jax.random.uniform(kb, (1, fan_out), jnp.float32, -bound, bound)
        params += [w, b]
    return tuple(params)


def _reference_forward(z, params, n_channels, ts_length):
    """Pure-JAX reference using the same bf16-input / f32-accumulate recipe."""
    w1, b1, w2, b2, w3, b3 = params
    bf = jnp.bfloat16
    x = jnp.maximum(jnp.dot(z.astype(bf), w1.astype(bf),
                            preferred_element_type=jnp.float32) + b1, 0.0)
    x = jnp.maximum(jnp.dot(x.astype(bf), w2.astype(bf),
                            preferred_element_type=jnp.float32) + b2, 0.0)
    x = jnp.dot(x.astype(bf), w3.astype(bf),
                preferred_element_type=jnp.float32) + b3
    return x.reshape(-1, n_channels, ts_length)


if __name__ == "__main__":
    latent_dim, n_channels, ts_length = 32, 4, 8

    key = jax.random.PRNGKey(0)
    key, k_params = jax.random.split(key)
    params = init_params(k_params, latent_dim, n_channels, ts_length)
    dev_params = prepare_params(params, n_channels, ts_length)   # one-time prep

    _vmem_budget_bytes()    # warm the hardware query outside tracing

    # Tiny demo batch + a ragged multi-tile batch (exercises grid >= 2 path).
    for batch in (2, 37):
        key, kz = jax.random.split(key)
        z = jax.random.normal(kz, (batch, latent_dim), dtype=jnp.float32)
        out = jax.block_until_ready(
            generator_forward(z, dev_params, n_channels, ts_length))
        ref = _reference_forward(z, params, n_channels, ts_length)
        assert out.shape == (batch, n_channels, ts_length)
        err = float(jnp.max(jnp.abs(out - ref)))
        assert err < 1e-3, f"batch={batch}: max abs err {err}"

    print("KERNEL_OK")
</pallas_src>

<mosaic_0001>
module attributes {stable_mosaic.version = 11 : i64} {
  func.func @_generator_kernel(%arg0: i32, %arg1: memref<8x32xf32, #tpu.memory_space<vmem>>, %arg2: memref<32x256xbf16, #tpu.memory_space<vmem>>, %arg3: memref<1x256xf32, #tpu.memory_space<vmem>>, %arg4: memref<256x512xbf16, #tpu.memory_space<vmem>>, %arg5: memref<1x512xf32, #tpu.memory_space<vmem>>, %arg6: memref<512x128xbf16, #tpu.memory_space<vmem>>, %arg7: memref<1x128xf32, #tpu.memory_space<vmem>>, %arg8: memref<8x128xf32, #tpu.memory_space<vmem>>) attributes {dimension_semantics = [#tpu.dimension_semantics<parallel>], iteration_bounds = array<i64: 1>, scalar_prefetch = 0 : i64, scratch_operands = 0 : i64, tpu.core_type = #tpu.core_type<tc>, window_params = [{transform_indices = @transform_0, window_bounds = array<i64: 8, 32>}, {pipeline_mode = #tpu.pipeline_mode<synchronous>, transform_indices = @transform_1, window_bounds = array<i64: 32, 256>}, {pipeline_mode = #tpu.pipeline_mode<synchronous>, transform_indices = @transform_2, window_bounds = array<i64: 1, 256>}, {pipeline_mode = #tpu.pipeline_mode<synchronous>, transform_indices = @transform_3, window_bounds = array<i64: 256, 512>}, {pipeline_mode = #tpu.pipeline_mode<synchronous>, transform_indices = @transform_4, window_bounds = array<i64: 1, 512>}, {pipeline_mode = #tpu.pipeline_mode<synchronous>, transform_indices = @transform_5, window_bounds = array<i64: 512, 128>}, {pipeline_mode = #tpu.pipeline_mode<synchronous>, transform_indices = @transform_6, window_bounds = array<i64: 1, 128>}, {transform_indices = @transform_7, window_bounds = array<i64: 8, 128>}]} {
    %c0 = arith.constant 0 : index
    %c0_0 = arith.constant 0 : index
    %0 = vector.load %arg1[%c0, %c0_0] : memref<8x32xf32, #tpu.memory_space<vmem>>, vector<8x32xf32>
    %1 = arith.truncf %0 : vector<8x32xf32> to vector<8x32xbf16>
    %c0_1 = arith.constant 0 : index
    %c0_2 = arith.constant 0 : index
    %2 = vector.load %arg2[%c0_1, %c0_2] : memref<32x256xbf16, #tpu.memory_space<vmem>>, vector<32x256xbf16>
    %cst = arith.constant dense<0.000000e+00> : vector<8x256xf32>
    %3 = tpu.matmul %1, %2, %cst {dimension_numbers = #tpu.dot_dimension_numbers<[1], [0], [0], [1], [0, 0, 1, 1], [], []>} : vector<8x32xbf16>, vector<32x256xbf16>, vector<8x256xf32> -> vector<8x256xf32>
    %c0_3 = arith.constant 0 : index
    %c0_4 = arith.constant 0 : index
    %4 = vector.load %arg3[%c0_3, %c0_4] : memref<1x256xf32, #tpu.memory_space<vmem>>, vector<1x256xf32>
    %5 = vector.broadcast %4 : vector<1x256xf32> to vector<8x256xf32>
    %6 = arith.addf %3, %5 : vector<8x256xf32>
    %cst_5 = arith.constant 0.000000e+00 : f32
    %7 = vector.broadcast %cst_5 : f32 to vector<8x256xf32>
    %8 = arith.maximumf %6, %7 : vector<8x256xf32>
    %9 = arith.truncf %8 : vector<8x256xf32> to vector<8x256xbf16>
    %c0_6 = arith.constant 0 : index
    %c0_7 = arith.constant 0 : index
    %10 = vector.load %arg4[%c0_6, %c0_7] : memref<256x512xbf16, #tpu.memory_space<vmem>>, vector<256x512xbf16>
    %cst_8 = arith.constant dense<0.000000e+00> : vector<8x512xf32>
    %11 = tpu.matmul %9, %10, %cst_8 {dimension_numbers = #tpu.dot_dimension_numbers<[1], [0], [0], [1], [0, 0, 1, 1], [], []>} : vector<8x256xbf16>, vector<256x512xbf16>, vector<8x512xf32> -> vector<8x512xf32>
    %c0_9 = arith.constant 0 : index
    %c0_10 = arith.constant 0 : index
    %12 = vector.load %arg5[%c0_9, %c0_10] : memref<1x512xf32, #tpu.memory_space<vmem>>, vector<1x512xf32>
    %13 = vector.broadcast %12 : vector<1x512xf32> to vector<8x512xf32>
    %14 = arith.addf %11, %13 : vector<8x512xf32>
    %cst_11 = arith.constant 0.000000e+00 : f32
    %15 = vector.broadcast %cst_11 : f32 to vector<8x512xf32>
    %16 = arith.maximumf %14, %15 : vector<8x512xf32>
    %17 = arith.truncf %16 : vector<8x512xf32> to vector<8x512xbf16>
    %c0_12 = arith.constant 0 : index
    %c0_13 = arith.constant 0 : index
    %18 = vector.load %arg6[%c0_12, %c0_13] : memref<512x128xbf16, #tpu.memory_space<vmem>>, vector<512x128xbf16>
    %cst_14 = arith.constant dense<0.000000e+00> : vector<8x128xf32>
    %19 = tpu.matmul %17, %18, %cst_14 {dimension_numbers = #tpu.dot_dimension_numbers<[1], [0], [0], [1], [0, 0, 1, 1], [], []>} : vector<8x512xbf16>, vector<512x128xbf16>, vector<8x128xf32> -> vector<8x128xf32>
    %c0_15 = arith.constant 0 : index
    %c0_16 = arith.constant 0 : index
    %20 = vector.load %arg7[%c0_15, %c0_16] : memref<1x128xf32, #tpu.memory_space<vmem>>, vector<1x128xf32>
    %21 = vector.broadcast %20 : vector<1x128xf32> to vector<8x128xf32>
    %22 = arith.addf %19, %21 : vector<8x128xf32>
    %c0_17 = arith.constant 0 : index
    %c0_18 = arith.constant 0 : index
    %23 = vector.load %arg8[%c0_17, %c0_18] : memref<8x128xf32, #tpu.memory_space<vmem>>, vector<8x128xf32>
    tpu.vector_store %arg8[%c0_17, %c0_18], %22 {strides = array<i32>} : memref<8x128xf32, #tpu.memory_space<vmem>>, vector<8x128xf32>,
    return
  }
  func.func @transform_0(%arg0: i32) -> (i32, i32) {
    %c0_i32 = arith.constant 0 : i32
    %c0_i32_0 = arith.constant 0 : i32
    return %arg0, %c0_i32 : i32, i32
  }
  func.func @transform_1(%arg0: i32) -> (i32, i32) {
    %c0_i32 = arith.constant 0 : i32
    %c0_i32_0 = arith.constant 0 : i32
    %c0_i32_1 = arith.constant 0 : i32
    return %c0_i32, %c0_i32_0 : i32, i32
  }
  func.func @transform_2(%arg0: i32) -> (i32, i32) {
    %c0_i32 = arith.constant 0 : i32
    %c0_i32_0 = arith.constant 0 : i32
    %c0_i32_1 = arith.constant 0 : i32
    return %c0_i32, %c0_i32_0 : i32, i32
  }
  func.func @transform_3(%arg0: i32) -> (i32, i32) {
    %c0_i32 = arith.constant 0 : i32
    %c0_i32_0 = arith.constant 0 : i32
    %c0_i32_1 = arith.constant 0 : i32
    return %c0_i32, %c0_i32_0 : i32, i32
  }
  func.func @transform_4(%arg0: i32) -> (i32, i32) {
    %c0_i32 = arith.constant 0 : i32
    %c0_i32_0 = arith.constant 0 : i32
    %c0_i32_1 = arith.constant 0 : i32
    return %c0_i32, %c0_i32_0 : i32, i32
  }
  func.func @transform_5(%arg0: i32) -> (i32, i32) {
    %c0_i32 = arith.constant 0 : i32
    %c0_i32_0 = arith.constant 0 : i32
    %c0_i32_1 = arith.constant 0 : i32
    return %c0_i32, %c0_i32_0 : i32, i32
  }
  func.func @transform_6(%arg0: i32) -> (i32, i32) {
    %c0_i32 = arith.constant 0 : i32
    %c0_i32_0 = arith.constant 0 : i32
    %c0_i32_1 = arith.constant 0 : i32
    return %c0_i32, %c0_i32_0 : i32, i32
  }
  func.func @transform_7(%arg0: i32) -> (i32, i32) {
    %c0_i32 = arith.constant 0 : i32
    %c0_i32_0 = arith.constant 0 : i32
    return %arg0, %c0_i32 : i32, i32
  }
}

</mosaic_0001>

<bundles_post_ra>
// kernel: generator_forward.1
= control target key start
LH: loop header
LB: loop body
LE: loop exit
PB: predicated region body
PF: predicated region fallthrough
CT: control target
= control target key end

     0   :  { %12 = vsyncpa [#allocation3], 0  ;;  %s1565_s0 = inlined_call_operand.hbm [shape: f32[2,32], index: 0, kind: input, shape index: {}]   ;;  %s1566_s1 = inlined_call_operand.hbm [shape: bf16[32,256], index: 1, kind: input, shape index: {}]   ;;  %s1567_s2 = inlined_call_operand.vmem [shape: f32[1,256], index: 2, kind: input, shape index: {}]   ;;  %s1568_s3 = inlined_call_operand.hbm [shape: bf16[256,512], index: 3, kind: input, shape index: {}]   ;;  %s1569_s4 = inlined_call_operand.vmem [shape: f32[1,512], index: 4, kind: input, shape index: {}]   ;;  %s1570_s5 = inlined_call_operand.hbm [shape: bf16[512,128], index: 5, kind: input, shape index: {}]   ;;  %s1571_s6 = inlined_call_operand.vmem [shape: f32[1,128], index: 6, kind: input, shape index: {}]   ;;  %s1572_s7 = inlined_call_operand.vmem [shape: f32[2,128], index: 7, kind: output, shape index: {}]  }
   0x1   :  { %13 = vsyncpa [#allocation5], 0 }
   0x2   :  { %14 = vsyncpa [#allocation8], 0 }
   0x3   :  { %19 = vsyncadd [#allocation3], 96  ;;  %s1438_s24 = smov [#allocation4]   ;;  %s1344_s28 = scalar_lea.hbm %s1566_s1, 512 }
   0x4   :  { %s32_s25 = sshll.u32 %s1438_s24, 4  ;;  %p1345_p0 = scmp.ne.s32.totalorder %s1566_s1, %s1344_s28  ;;  %s33_s25 = int_to_ptr.vmem [resolvable:$true] %s32_s25 }
   0x5   :  { %p1348_p1 = scmp.lt.u32.totalorder %s1344_s28, %s1566_s1 }
   0x7   :  { %p1350_p2 = pnand %p1348_p1, %p1345_p0 }
   0x9   :  { %1353 = shalt.err (!%p1350_p2)
}
   0xa   :  { %s1354_s10 = scalar_lea.vmem %s33_s25, 512  ;;  %p1359_p4 = scmp.lt.s32.totalorder %s33_s25, %s33_s25 }
   0xb   :  { %p1355_p3 = scmp.ne.s32.totalorder %s33_s25, %s1354_s10  ;;  %p1360_p5 = scmp.lt.s32.totalorder %s1354_s10, %s1354_s10 }
   0xd   :  { %p1361_p6 = por %p1360_p5, %p1359_p4 }
   0xf   :  { %p1362_p7 = pnand %p1361_p6, %p1355_p3 }
  0x11   :  { %1365 = shalt.err (!%p1362_p7)
}
  0x12   :  { %s1439_s11 = smov 128   ;;  %s1440_s12 = smov 8  }
  0x13   :  { %38 = dma.hbm_to_vmem [thread:$0]  %s1566_s1, 512, %s33_s25, [#allocation5], %s1439_s11, %s1439_s11, %s1440_s12  }
  0x14   :  { %s1441_s15 = smov [#allocation2]   ;;  %s1366_s19 = scalar_lea.hbm %s1565_s0, 32 }
  0x15   :  { %s20_s16 = sshll.u32 %s1441_s15, 4  ;;  %p1367_p8 = scmp.ne.s32.totalorder %s1565_s0, %s1366_s19  ;;  %s21_s16 = int_to_ptr.vmem [resolvable:$true] %s20_s16 }
  0x16   :  { %p1370_p9 = scmp.lt.u32.totalorder %s1366_s19, %s1565_s0 }
  0x18   :  { %p1372_p10 = pnand %p1370_p9, %p1367_p8 }
  0x1a   :  { %1375 = shalt.err (!%p1372_p10)
}
  0x1b   :  { %s1376_s24 = scalar_lea.vmem %s21_s16, 32  ;;  %s1380_s1 = scalar_lea.vmem %s21_s16, 128 }
  0x1c   :  { %p1377_p11 = scmp.ne.s32.totalorder %s21_s16, %s1376_s24  ;;  %p1381_p12 = scmp.lt.s32.totalorder %s21_s16, %s21_s16 }
  0x1d   :  { %p1382_p13 = scmp.lt.s32.totalorder %s1380_s1, %s1376_s24 }
  0x1f   :  { %p1383_p0 = por %p1382_p13, %p1381_p12 }
  0x21   :  { %p1384_p1 = pnand %p1383_p0, %p1377_p11 }
  0x23   :  { %1387 = shalt.err (!%p1384_p1)
}
  0x24   :  { %s1442_s25 = smov 32   ;;  %s1443_s26 = smov 2  }
  0x25   :  { %26 = dma.hbm_to_vmem [thread:$0]  %s1565_s0, 32, %s21_s16, [#allocation3], %s1442_s25, %s1442_s25, %s1443_s26  }
  0x26   :  { %s1444_s29 = smov [#allocation6]   ;;  %s1388_s10 = scalar_lea.hbm %s1568_s3, 8192 }
  0x27   :  { %s46_s30 = sshll.u32 %s1444_s29, 4  ;;  %p1389_p2 = scmp.ne.s32.totalorder %s1568_s3, %s1388_s10  ;;  %s47_s30 = int_to_ptr.vmem [resolvable:$true] %s46_s30 }
  0x28   :  { %p1392_p3 = scmp.lt.u32.totalorder %s1388_s10, %s1568_s3 }
  0x2a   :  { %p1394_p4 = pnand %p1392_p3, %p1389_p2 }
  0x2c   :  { %1397 = shalt.err (!%p1394_p4)
}
  0x2d   :  { %s1398_s15 = scalar_lea.vmem %s47_s30, 8192  ;;  %p1403_p6 = scmp.lt.s32.totalorder %s47_s30, %s47_s30 }
  0x2e   :  { %p1399_p5 = scmp.ne.s32.totalorder %s47_s30, %s1398_s15  ;;  %p1404_p7 = scmp.lt.s32.totalorder %s1398_s15, %s1398_s15 }
  0x30   :  { %p1405_p8 = por %p1404_p7, %p1403_p6 }
  0x32   :  { %p1406_p9 = pnand %p1405_p8, %p1399_p5 }
  0x34   :  { %1409 = shalt.err (!%p1406_p9)
}
  0x35   :  { %s1445_s0 = smov 256   ;;  %s1446_s16 = smov 16  }
  0x36   :  { %52 = dma.hbm_to_vmem [thread:$0]  %s1568_s3, 8192, %s47_s30, [#allocation5], %s1445_s0, %s1445_s0, %s1446_s16  }
  0x37   :  { %s1447_s19 = smov [#allocation7]   ;;  %s1410_s23 = scalar_lea.hbm %s1570_s5, 4096 }
  0x38   :  { %s60_s20 = sshll.u32 %s1447_s19, 4  ;;  %p1411_p10 = scmp.ne.s32.totalorder %s1570_s5, %s1410_s23  ;;  %s61_s20 = int_to_ptr.vmem [resolvable:$true] %s60_s20 }
  0x39   :  { %p1414_p11 = scmp.lt.u32.totalorder %s1410_s23, %s1570_s5 }
  0x3b   :  { %p1416_p12 = pnand %p1414_p11, %p1411_p10 }
  0x3d   :  { %1419 = shalt.err (!%p1416_p12)
}
  0x3e   :  { %s1420_s27 = scalar_lea.vmem %s61_s20, 4096  ;;  %p1425_p0 = scmp.lt.s32.totalorder %s61_s20, %s61_s20 }
  0x3f   :  { %p1421_p13 = scmp.ne.s32.totalorder %s61_s20, %s1420_s27  ;;  %p1426_p1 = scmp.lt.s32.totalorder %s1420_s27, %s1420_s27 }
  0x41   :  { %p1427_p2 = por %p1426_p1, %p1425_p0 }
  0x43   :  { %p1428_p3 = pnand %p1427_p2, %p1421_p13 }
  0x45   :  { %1431 = shalt.err (!%p1428_p3)
}
  0x46   :  { %s1448_s3 = smov 64   ;;  %s1449_s28 = smov 4  }
  0x47   :  { %66 = dma.hbm_to_vmem [thread:$0]  %s1570_s5, 4096, %s61_s20, [#allocation8], %s1448_s3, %s1448_s3, %s1449_s28  }
  0x48   :  { %1432 = dma.done.wait [#allocation3], 128  }
  0x49   :  { %1433 = vsyncadd [#allocation3], 4294967168 }
  0x4a   :  { %1434 = dma.done.wait [#allocation5], 8704  }
  0x4b   :  { %1435 = vsyncadd [#allocation5], 4294958592 }
  0x4c   :  { %1436 = dma.done.wait [#allocation8], 4096  }
  0x4d   :  { %1437 = vsyncadd [#allocation8], 4294963200  ;;  %v1450_v0 = vmov 0   ;;  %v1210_v1 = vld [vmem:[#allocation4 + $0x4] ss:$8 sps:$4 sm:$0xff]   ;;  %v82_v5 = vld [vmem:[#allocation2] sm:$0xff] }
  0x4e   :  { %156 = vmatprep.mubr.bf16.mxu0 %v1450_v0  ;;  %v1212_v2 = vld [vmem:[#allocation4] ss:$8 sps:$4 sm:$0xff]   ;;  %124 = vmatprep.subr.bf16.mxu0 %v1210_v1  ;;  %v1213_v3 = vld [vmem:[#allocation4 + $0x14] ss:$8 sps:$4 sm:$0xff]   ;;  %v1215_v4 = vld [vmem:[#allocation4 + $0x10] ss:$8 sps:$4 sm:$0xff]   ;;  %v83_v9 = vpack.c.bf16 %v82_v5, %v82_v5 }
  0x4f   :  { %125 = vmatpush1.bf16.msra.mxu0 %v1212_v2  ;;  %v1216_v6 = vld [vmem:[#allocation6 + $0x4] ss:$16 sps:$4 sm:$0xff]   ;;  %v1220_v7 = vld [vmem:[#allocation6 + $0xc] ss:$16 sps:$4 sm:$0xff]   ;;  %v1221_v8 = vld [vmem:[#allocation6] ss:$16 sps:$4 sm:$0xff]  }
  0x50   :  { %126 = vmatprep.subr.bf16.mxu0 %v1213_v3  ;;  %575 = vmatprep.subr.bf16.mxu1 %v1216_v6  ;;  %v1222_v10 = vld [vmem:[#allocation6 + $0x24] ss:$16 sps:$4 sm:$0xff]   ;;  %vm120_vm0 = vcmask 261120   ;;  %v1218_v11 = vld [vmem:[#allocation6 + $0x8] ss:$16 sps:$4 sm:$0xff]  }
  0x51   :  { %576 = vmatpush1.bf16.msra.mxu1 %v1221_v8  ;;  %v1226_v12 = vld [vmem:[#allocation6 + $0x2c] ss:$16 sps:$4 sm:$0xff]   ;;  %v1227_v13 = vld [vmem:[#allocation6 + $0x20] ss:$16 sps:$4 sm:$0xff]   ;;  %v1228_v14 = vld [vmem:[#allocation6 + $0x44] ss:$16 sps:$4 sm:$0xff]  }
  0x52   :  { %577 = vmatprep.subr.bf16.mxu1 %v1222_v10  ;;  %v1224_v15 = vld [vmem:[#allocation6 + $0x28] ss:$16 sps:$4 sm:$0xff]   ;;  %v1232_v16 = vld [vmem:[#allocation6 + $0x4c] ss:$16 sps:$4 sm:$0xff]   ;;  %v1233_v17 = vld [vmem:[#allocation6 + $0x40] ss:$16 sps:$4 sm:$0xff]  }
  0x53   :  { %127 = vmatpush1.bf16.msra.mxu0 %v1215_v4  ;;  %v1234_v18 = vld [vmem:[#allocation6 + $0x64] ss:$16 sps:$4 sm:$0xff]   ;;  %v1230_v19 = vld [vmem:[#allocation6 + $0x48] ss:$16 sps:$4 sm:$0xff]   ;;  %v1238_v20 = vld [vmem:[#allocation6 + $0x6c] ss:$16 sps:$4 sm:$0xff]  }
  0x54   :  { %616 = vmatprep.subr.bf16.mxu0 %v1220_v7  ;;  %v1239_v21 = vld [vmem:[#allocation6 + $0x60] ss:$16 sps:$4 sm:$0xff]   ;;  %v1240_v22 = vld [vmem:[#allocation6 + $0x84] ss:$16 sps:$4 sm:$0xff]   ;;  %v1236_v23 = vld [vmem:[#allocation6 + $0x68] ss:$16 sps:$4 sm:$0xff]  }
  0x55   :  { %578 = vmatpush1.bf16.msra.mxu1 %v1227_v13  ;;  %v1244_v24 = vld [vmem:[#allocation6 + $0x8c] ss:$16 sps:$4 sm:$0xff]   ;;  %v1245_v25 = vld [vmem:[#allocation6 + $0x80] ss:$16 sps:$4 sm:$0xff]   ;;  %v1246_v26 = vld [vmem:[#allocation6 + $0xa4] ss:$16 sps:$4 sm:$0xff]  }
  0x56   :  { %1055 = vmatmul.mubr.msk.bf16.vlgmr.msra.gmra.mrb[0].mxu0 %vm120_vm0, %v83_v9  ;;  %579 = vmatprep.subr.bf16.mxu1 %v1228_v14  ;;  %v1242_v27 = vld [vmem:[#allocation6 + $0x88] ss:$16 sps:$4 sm:$0xff]   ;;  %v1250_v28 = vld [vmem:[#allocation6 + $0xac] ss:$16 sps:$4 sm:$0xff]   ;;  %v1251_v29 = vld [vmem:[#allocation6 + $0xa0] ss:$16 sps:$4 sm:$0xff]   ;;  %v90_v9 = vlaneseq }
  0x57   :  { %617 = vmatpush1.bf16.msra.mxu0 %v1218_v11  ;;  %v1252_v30 = vld [vmem:[#allocation6 + $0xc4] ss:$16 sps:$4 sm:$0xff]   ;;  %v1248_v31 = vld [vmem:[#allocation6 + $0xa8] ss:$16 sps:$4 sm:$0xff]   ;;  %v1256_v32 = vld [vmem:[#allocation6 + $0xcc] ss:$16 sps:$4 sm:$0xff]  }
  0x58   :  { %618 = vmatprep.subr.bf16.mxu0 %v1226_v12  ;;  %v1257_v33 = vld [vmem:[#allocation6 + $0xc0] ss:$16 sps:$4 sm:$0xff]   ;;  %v1258_v34 = vld [vmem:[#allocation6 + $0xe4] ss:$16 sps:$4 sm:$0xff]   ;;  %v1254_v35 = vld [vmem:[#allocation6 + $0xc8] ss:$16 sps:$4 sm:$0xff]  }
  0x59   :  { %580 = vmatpush1.bf16.msra.mxu1 %v1233_v17  ;;  %v1262_v36 = vld [vmem:[#allocation6 + $0xec] ss:$16 sps:$4 sm:$0xff]   ;;  %v1263_v37 = vld [vmem:[#allocation6 + $0xe0] ss:$16 sps:$4 sm:$0xff]   ;;  %v1264_v38 = vld [vmem:[#allocation6 + $0x104] ss:$16 sps:$4 sm:$0xff]  }
  0x5a   :  { %581 = vmatprep.subr.bf16.mxu1 %v1234_v18  ;;  %v1260_v39 = vld [vmem:[#allocation6 + $0xe8] ss:$16 sps:$4 sm:$0xff]   ;;  %v1268_v40 = vld [vmem:[#allocation6 + $0x10c] ss:$16 sps:$4 sm:$0xff]   ;;  %v1269_v41 = vld [vmem:[#allocation6 + $0x100] ss:$16 sps:$4 sm:$0xff]  }
  0x5b   :  { %619 = vmatpush1.bf16.msra.mxu0 %v1224_v15  ;;  %v1270_v42 = vld [vmem:[#allocation6 + $0x124] ss:$16 sps:$4 sm:$0xff]   ;;  %v1266_v43 = vld [vmem:[#allocation6 + $0x108] ss:$16 sps:$4 sm:$0xff]   ;;  %v1275_v44 = vld [vmem:[#allocation6 + $0x120] ss:$16 sps:$4 sm:$0xff]  }
  0x5c   :  { %620 = vmatprep.subr.bf16.mxu0 %v1232_v16  ;;  %v1274_v45 = vld [vmem:[#allocation6 + $0x12c] ss:$16 sps:$4 sm:$0xff]   ;;  %v1276_v46 = vld [vmem:[#allocation6 + $0x144] ss:$16 sps:$4 sm:$0xff]   ;;  %v1272_v47 = vld [vmem:[#allocation6 + $0x128] ss:$16 sps:$4 sm:$0xff]  }
  0x5d   :  { %582 = vmatpush1.bf16.msra.mxu1 %v1239_v21  ;;  %v1281_v48 = vld [vmem:[#allocation6 + $0x140] ss:$16 sps:$4 sm:$0xff]   ;;  %v1280_v49 = vld [vmem:[#allocation6 + $0x14c] ss:$16 sps:$4 sm:$0xff]   ;;  %v1282_v50 = vld [vmem:[#allocation6 + $0x164] ss:$16 sps:$4 sm:$0xff]  }
  0x5e   :  { %583 = vmatprep.subr.bf16.mxu1 %v1240_v22  ;;  %v1278_v51 = vld [vmem:[#allocation6 + $0x148] ss:$16 sps:$4 sm:$0xff]   ;;  %v1287_v52 = vld [vmem:[#allocation6 + $0x160] ss:$16 sps:$4 sm:$0xff]   ;;  %v1286_v53 = vld [vmem:[#allocation6 + $0x16c] ss:$16 sps:$4 sm:$0xff]  }
  0x5f   :  { %621 = vmatpush1.bf16.msra.mxu0 %v1230_v19  ;;  %v1288_v54 = vld [vmem:[#allocation6 + $0x184] ss:$16 sps:$4 sm:$0xff]   ;;  %v1284_v55 = vld [vmem:[#allocation6 + $0x168] ss:$16 sps:$4 sm:$0xff]   ;;  %v1293_v56 = vld [vmem:[#allocation6 + $0x180] ss:$16 sps:$4 sm:$0xff]  }
  0x60   :  { %622 = vmatprep.subr.bf16.mxu0 %v1238_v20  ;;  %v1292_v57 = vld [vmem:[#allocation6 + $0x18c] ss:$16 sps:$4 sm:$0xff]   ;;  %v1294_v58 = vld [vmem:[#allocation6 + $0x1a4] ss:$16 sps:$4 sm:$0xff]   ;;  %v1290_v59 = vld [vmem:[#allocation6 + $0x188] ss:$16 sps:$4 sm:$0xff]  }
  0x61   :  { %584 = vmatpush1.bf16.msra.mxu1 %v1245_v25  ;;  %v1299_v60 = vld [vmem:[#allocation6 + $0x1a0] ss:$16 sps:$4 sm:$0xff]   ;;  %v1298_v61 = vld [vmem:[#allocation6 + $0x1ac] ss:$16 sps:$4 sm:$0xff]   ;;  %v1296_v62 = vld [vmem:[#allocation6 + $0x1a8] ss:$16 sps:$4 sm:$0xff]  }
  0x62   :  { %585 = vmatprep.subr.bf16.mxu1 %v1246_v26  ;;  %v1300_v63 = vld [vmem:[#allocation6 + $0x1c4] ss:$16 sps:$4 sm:$0xff]   ;;  %v1304_v0 = vld [vmem:[#allocation6 + $0x1cc] ss:$16 sps:$4 sm:$0xff]   ;;  %v1302_v1 = vld [vmem:[#allocation6 + $0x1c8] ss:$16 sps:$4 sm:$0xff]  }
  0x63   :  { %623 = vmatpush1.bf16.msra.mxu0 %v1236_v23  ;;  %v1305_v2 = vld [vmem:[#allocation6 + $0x1c0] ss:$16 sps:$4 sm:$0xff]   ;;  %v1306_v3 = vld [vmem:[#allocation6 + $0x1e4] ss:$16 sps:$4 sm:$0xff]   ;;  %v1310_v4 = vld [vmem:[#allocation6 + $0x1ec] ss:$16 sps:$4 sm:$0xff]  }
  0x64   :  { %624 = vmatprep.subr.bf16.mxu0 %v1244_v24  ;;  %v1308_v5 = vld [vmem:[#allocation6 + $0x1e8] ss:$16 sps:$4 sm:$0xff]   ;;  %v1311_v6 = vld [vmem:[#allocation6 + $0x1e0] ss:$16 sps:$4 sm:$0xff]   ;;  %v1539_v10 = vshrl.u32 %v90_v9, 7 }
  0x65   :  { %586 = vmatpush1.bf16.msra.mxu1 %v1251_v29  ;;  %v1312_v7 = vld [vmem:[#allocation7 + $0x40] sm:$0xff]   ;;  %v88_v12 = vld [vmem:[%s1567_s2] sm:$0x3]  ;;  %v1317_v29 = vld [vmem:[#allocation7 + $0xc8] sm:$0xff]  }
  0x66   :  { %587 = vmatprep.subr.bf16.mxu1 %v1252_v30  ;;  %v1313_v8 = vld [vmem:[#allocation7 + $0xc0] sm:$0xff]   ;;  %v92_v11 = vsub.s32 0, %v1539_v10  ;;  %v96_v13 = vsub.s32 1, %v1539_v10  ;;  %v1318_v30 = vld [vmem:[#allocation7 + $0x8] sm:$0xff]  }
  0x67   :  { %625 = vmatpush1.bf16.msra.mxu0 %v1242_v27  ;;  %v1314_v25 = vld [vmem:[#allocation7] sm:$0xff]  }
  0x68   :  { %626 = vmatprep.subr.bf16.mxu0 %v1250_v28  ;;  %v93_v14 = vrot.slane %v88_v12, %v92_v11  ;;  %v97_v15 = vrot.slane %v88_v12, %v96_v13  ;;  %v1315_v26 = vld [vmem:[#allocation7 + $0x80] sm:$0xff]   ;;  %v1316_v28 = vld [vmem:[#allocation7 + $0x48] sm:$0xff]  }
  0x69   :  { %588 = vmatpush1.bf16.msra.mxu1 %v1257_v33  ;;  %v1321_v33 = vld [vmem:[#allocation7 + $0xd0] sm:$0xff]  }
  0x6a   :  { %589 = vmatprep.subr.bf16.mxu1 %v1258_v34  ;;  %v1322_v34 = vld [vmem:[#allocation7 + $0x10] sm:$0xff]  }
  0x6b   :  { %627 = vmatpush1.bf16.msra.mxu0 %v1248_v31  ;;  %v1319_v31 = vld [vmem:[#allocation7 + $0x88] sm:$0xff]  }
  0x6c   :  { %628 = vmatprep.subr.bf16.mxu0 %v1256_v32  ;;  %v1320_v32 = vld [vmem:[#allocation7 + $0x50] sm:$0xff]  }
  0x6d   :  { %590 = vmatpush1.bf16.msra.mxu1 %v1263_v37  ;;  %v1325_v37 = vld [vmem:[#allocation7 + $0xd8] sm:$0xff]  }
  0x6e   :  { %591 = vmatprep.subr.bf16.mxu1 %v1264_v38  ;;  %v1326_v38 = vld [vmem:[#allocation7 + $0x18] sm:$0xff]  }
  0x6f   :  { %629 = vmatpush1.bf16.msra.mxu0 %v1254_v35  ;;  %v1323_v35 = vld [vmem:[#allocation7 + $0x90] sm:$0xff]  }
  0x70   :  { %630 = vmatprep.subr.bf16.mxu0 %v1262_v36  ;;  %v1324_v36 = vld [vmem:[#allocation7 + $0x58] sm:$0xff]  }
  0x71   :  { %592 = vmatpush1.bf16.msra.mxu1 %v1269_v41  ;;  %v1329_v41 = vld [vmem:[#allocation7 + $0xe0] sm:$0xff]  }
  0x72   :  { %593 = vmatprep.subr.bf16.mxu1 %v1270_v42  ;;  %v1330_v42 = vld [vmem:[#allocation7 + $0x20] sm:$0xff]  }
  0x73   :  { %631 = vmatpush1.bf16.msra.mxu0 %v1260_v39  ;;  %v1327_v39 = vld [vmem:[#allocation7 + $0x98] sm:$0xff]  }
  0x74   :  { %632 = vmatprep.subr.bf16.mxu0 %v1268_v40  ;;  %v1328_v40 = vld [vmem:[#allocation7 + $0x60] sm:$0xff]  }
  0x75   :  { %594 = vmatpush1.bf16.msra.mxu1 %v1275_v44  ;;  %v1332_v44 = vld [vmem:[#allocation7 + $0x68] sm:$0xff]  }
  0x76   :  { %595 = vmatprep.subr.bf16.mxu1 %v1276_v46  ;;  %v1334_v46 = vld [vmem:[#allocation7 + $0x28] sm:$0xff]  }
  0x77   :  { %633 = vmatpush1.bf16.msra.mxu0 %v1266_v43  ;;  %v1331_v43 = vld [vmem:[#allocation7 + $0xa0] sm:$0xff]  }
  0x78   :  { %634 = vmatprep.subr.bf16.mxu0 %v1274_v45  ;;  %v1333_v45 = vld [vmem:[#allocation7 + $0xe8] sm:$0xff]  }
  0x79   :  { %596 = vmatpush1.bf16.msra.mxu1 %v1281_v48  ;;  %v1336_v48 = vld [vmem:[#allocation7 + $0x70] sm:$0xff]  }
  0x7a   :  { %597 = vmatprep.subr.bf16.mxu1 %v1282_v50  ;;  %v1338_v50 = vld [vmem:[#allocation7 + $0x30] sm:$0xff]  }
  0x7b   :  { %635 = vmatpush1.bf16.msra.mxu0 %v1272_v47  ;;  %v1335_v47 = vld [vmem:[#allocation7 + $0xa8] sm:$0xff]  }
  0x7c   :  { %636 = vmatprep.subr.bf16.mxu0 %v1280_v49  ;;  %v1337_v49 = vld [vmem:[#allocation7 + $0xf0] sm:$0xff]  }
  0x7d   :  { %598 = vmatpush1.bf16.msra.mxu1 %v1287_v52  ;;  %v1340_v52 = vld [vmem:[#allocation7 + $0x78] sm:$0xff]  }
  0x7e   :  { %599 = vmatprep.subr.bf16.mxu1 %v1288_v54  ;;  %v1342_v54 = vld [vmem:[#allocation7 + $0x38] sm:$0xff]  }
  0x7f   :  { %637 = vmatpush1.bf16.msra.mxu0 %v1278_v51  ;;  %v1339_v51 = vld [vmem:[#allocation7 + $0xb0] sm:$0xff]  }
  0x80   :  { %638 = vmatprep.subr.bf16.mxu0 %v1286_v53  ;;  %v1341_v53 = vld [vmem:[#allocation7 + $0xf8] sm:$0xff]  }
  0x81   :  { %600 = vmatpush1.bf16.msra.mxu1 %v1293_v56  ;;  %v245_v56 = vsub.s32 2, %v1539_v10 }
  0x82   :  { %601 = vmatprep.subr.bf16.mxu1 %v1294_v58  ;;  %v249_v58 = vsub.s32 3, %v1539_v10 }
  0x83   :  { %639 = vmatpush1.bf16.msra.mxu0 %v1284_v55  ;;  %v1343_v55 = vld [vmem:[#allocation7 + $0xb8] sm:$0xff]  }
  0x84   :  { %640 = vmatprep.subr.bf16.mxu0 %v1292_v57  ;;  %v233_v57 = vld [vmem:[%s1569_s4] sm:$0xf] }
  0x85   :  { %602 = vmatpush1.bf16.msra.mxu1 %v1299_v60  ;;  %v246_v60 = vrot.slane %v233_v57, %v245_v56 }
  0x86   :  { %603 = vmatprep.subr.bf16.mxu1 %v1300_v63 }
  0x87   :  { %641 = vmatpush1.bf16.msra.mxu0 %v1290_v59  ;;  %v238_v59 = vrot.slane %v233_v57, %v92_v11 }
  0x88   :  { %642 = vmatprep.subr.bf16.mxu0 %v1298_v61  ;;  %v242_v61 = vrot.slane %v233_v57, %v96_v13 }
  0x89   :  { %604 = vmatpush1.bf16.msra.mxu1 %v1305_v2 }
  0x8a   :  { %605 = vmatprep.subr.bf16.mxu1 %v1306_v3 }
  0x8b   :  { %643 = vmatpush1.bf16.msra.mxu0 %v1296_v62  ;;  %v250_v62 = vrot.slane %v233_v57, %v249_v58 }
  0x8c   :  { %644 = vmatprep.subr.bf16.mxu0 %v1304_v0 }
  0x8d   :  { %606 = vmatpush1.bf16.msra.mxu1 %v1311_v6 }
  0x8e   :  { %1153 = vmatprep.subr.bf16.mxu1 %v1312_v7 }
  0x8f   :  { %645 = vmatpush1.bf16.msra.mxu0 %v1302_v1 }
  0x90   :  { %646 = vmatprep.subr.bf16.mxu0 %v1310_v4 }
  0x93   :  { %647 = vmatpush1.bf16.msra.mxu0 %v1308_v5 }
  0x94   :  { %1175 = vmatprep.subr.bf16.mxu0 %v1313_v8 }
 0x129   :  { %v158_v16 = vpop.f32.mrb[0].mxu0 }
 0x12a   :  { %v159_v17 = vadd.f32 %v158_v16, %v93_v14  ;;  %v160_v18 = vpop.f32.mrb[1].mxu0 }
 0x12b   :  { %v161_v19 = vadd.f32 %v160_v18, %v97_v15  ;;  %v162_v20 = vpop.f32.mrb[2].mxu0 }
 0x12c   :  { %v165_v21 = vmax.f32 %v159_v17, 0.0  ;;  %v163_v22 = vpop.f32.mrb[3].mxu0 }
 0x12d   :  { %v166_v23 = vmax.f32 %v161_v19, 0.0 }
 0x12e   :  { %v167_v27 = vpack.c.bf16 %v165_v21, %v165_v21  ;;  %v1120_v21 = vld [vmem:[%s1571_s6] ss:$0 sm:$0xff] }
 0x12f   :  { %v168_v24 = vpack.c.bf16 %v166_v23, %v166_v23 }
 0x131   :  { %607 = vmatprep.mubr.bf16.mxu1 %v168_v24  ;;  %648 = vmatprep.mubr.bf16.mxu0 %v168_v24 }
 0x132   :  { %608 = vmatmul.mubr.bf16.vlgmr.msra.gmra.mrb[0].mxu1 %v167_v27  ;;  %649 = vmatmul.mubr.bf16.vlgmr.msra.gmra.mrb[4].mxu0 %v167_v27 }
 0x133   :  { %1154 = vmatpush3.bf16.msra.mxu1 %v1314_v25  ;;  %1176 = vmatpush3.bf16.msra.mxu0 %v1315_v26 }
 0x134   :  { %1155 = vmatprep.subr.bf16.mxu1 %v1316_v28  ;;  %1177 = vmatprep.subr.bf16.mxu0 %v1317_v29 }
 0x137   :  { %1156 = vmatpush3.bf16.msra.mxu1 %v1318_v30  ;;  %1178 = vmatpush3.bf16.msra.mxu0 %v1319_v31 }
 0x138   :  { %1157 = vmatprep.subr.bf16.mxu1 %v1320_v32  ;;  %1179 = vmatprep.subr.bf16.mxu0 %v1321_v33 }
 0x13b   :  { %1158 = vmatpush3.bf16.msra.mxu1 %v1322_v34  ;;  %1180 = vmatpush3.bf16.msra.mxu0 %v1323_v35 }
 0x13c   :  { %1159 = vmatprep.subr.bf16.mxu1 %v1324_v36  ;;  %1181 = vmatprep.subr.bf16.mxu0 %v1325_v37 }
 0x13f   :  { %1160 = vmatpush3.bf16.msra.mxu1 %v1326_v38  ;;  %1182 = vmatpush3.bf16.msra.mxu0 %v1327_v39 }
 0x140   :  { %1161 = vmatprep.subr.bf16.mxu1 %v1328_v40  ;;  %1183 = vmatprep.subr.bf16.mxu0 %v1329_v41 }
 0x143   :  { %1162 = vmatpush3.bf16.msra.mxu1 %v1330_v42  ;;  %1184 = vmatpush3.bf16.msra.mxu0 %v1331_v43 }
 0x144   :  { %1163 = vmatprep.subr.bf16.mxu1 %v1332_v44  ;;  %1185 = vmatprep.subr.bf16.mxu0 %v1333_v45 }
 0x147   :  { %1164 = vmatpush3.bf16.msra.mxu1 %v1334_v46  ;;  %1186 = vmatpush3.bf16.msra.mxu0 %v1335_v47 }
 0x148   :  { %1165 = vmatprep.subr.bf16.mxu1 %v1336_v48  ;;  %1187 = vmatprep.subr.bf16.mxu0 %v1337_v49 }
 0x14b   :  { %1166 = vmatpush3.bf16.msra.mxu1 %v1338_v50  ;;  %1188 = vmatpush3.bf16.msra.mxu0 %v1339_v51 }
 0x14c   :  { %1167 = vmatprep.subr.bf16.mxu1 %v1340_v52  ;;  %1189 = vmatprep.subr.bf16.mxu0 %v1341_v53 }
 0x14f   :  { %1168 = vmatpush3.bf16.msra.mxu1 %v1342_v54  ;;  %1190 = vmatpush3.bf16.msra.mxu0 %v1343_v55 }
 0x205   :  { %v609_v63 = vpop.f32.mrb[0].mxu1  ;;  %v650_v0 = vpop.f32.mrb[4].mxu0 }
 0x206   :  { %v610_v1 = vadd.f32 %v609_v63, %v238_v59  ;;  %v651_v2 = vadd.f32 %v650_v0, %v246_v60  ;;  %v611_v3 = vpop.f32.mrb[1].mxu1  ;;  %v652_v4 = vpop.f32.mrb[5].mxu0 }
 0x207   :  { %v612_v5 = vadd.f32 %v611_v3, %v242_v61  ;;  %v653_v6 = vadd.f32 %v652_v4, %v250_v62  ;;  %v613_v7 = vpop.f32.mrb[2].mxu1  ;;  %v654_v8 = vpop.f32.mrb[6].mxu0 }
 0x208   :  { %v657_v9 = vmax.f32 %v610_v1, 0.0  ;;  %v659_v12 = vmax.f32 %v651_v2, 0.0  ;;  %v614_v14 = vpop.f32.mrb[3].mxu1  ;;  %v655_v15 = vpop.f32.mrb[7].mxu0 }
 0x209   :  { %v658_v11 = vmax.f32 %v612_v5, 0.0  ;;  %v660_v16 = vmax.f32 %v653_v6, 0.0 }
 0x20a   :  { %v661_v13 = vpack.c.bf16 %v657_v9, %v657_v9  ;;  %v663_v18 = vpack.c.bf16 %v659_v12, %v659_v12 }
 0x20b   :  { %v662_v17 = vpack.c.bf16 %v658_v11, %v658_v11  ;;  %v664_v10 = vpack.c.bf16 %v660_v16, %v660_v16 }
 0x20d   :  { %960 = vmatprep.mubr.bf16.mxu1 %v662_v17  ;;  %1000 = vmatprep.mubr.bf16.mxu0 %v664_v10 }
 0x20e   :  { %961 = vmatmul.mubr.bf16.vlgmr.msra.gmra.mrb[4].mxu1 %v661_v13  ;;  %1001 = vmatmul.mubr.bf16.vlgmr.msra.gmra.mrb[8].mxu0 %v663_v18 }
 0x2e1   :  { %v1169_v19 = vpop.f32.mrb[4].mxu1  ;;  %v1191_v20 = vpop.f32.mrb[8].mxu0 }
 0x2e2   :  { %v1170_v22 = vpop.f32.mrb[5].mxu1  ;;  %v1192_v23 = vpop.f32.mrb[9].mxu0 }
 0x2e3   :  { %v1171_v24 = vadd.f32 %v1170_v22, %v1169_v19  ;;  %v1193_v25 = vadd.f32 %v1192_v23, %v1191_v20  ;;  %v1172_v26 = vpop.f32.mrb[6].mxu1  ;;  %v1194_v27 = vpop.f32.mrb[10].mxu0 }
 0x2e4   :  { %v1173_v28 = vpop.f32.mrb[7].mxu1  ;;  %v1195_v29 = vpop.f32.mrb[11].mxu0 }
 0x2e5   :  { %v963_v30 = vadd.f32 %v1171_v24, %v1120_v21 }
 0x2e7   :  { %v1003_v31 = vadd.f32 %v1193_v25, %v963_v30 }
 0x2e9   :  { %1008 = vst [vmem:[#allocation9] sm:$0xff] %v1003_v31 }
 0x2f0   :  { %v1026_v32 = vld [vmem:[#allocation9] sm:$0x3] }
 0x2f1   :  { %1027 = vst [vmem:[%s1572_s7] sm:$0x3] %v1026_v32 }
 0x2f2   :  { %1044 = vsyncpa [#allocation3], 1 }
 0x2f3   :  { %1045 = vsyncpa [#allocation5], 1 }
 0x2f4   :  { %1046 = vsyncpa [#allocation8], 1 }

</bundles_post_ra>
